<compile_context>
chip_gen: v5e
topology: v5e:2x2
jax: 0.10.0
libtpu: 0.0.40
codegen_flags: <defaults>
</compile_context>

<pallas_src>
import functools

import jax
import jax.numpy as jnp
from jax.experimental import pallas as pl
from jax.experimental.pallas import tpu as pltpu

LANE = 128  # TPU lane width; kernel output last dim is padded to this.


def noisy_linear_kernel(lat_ref, rec_ref, wmu_ref, wsig_in_ref,
                        eps_out_ref, beff_ref, o_ref, *, split):
    # Effective noisy weight on the VPU. eps_in was folded into wsig_in at
    # reset_noise time, so only the (1, A_pad) eps_out sublane-broadcast
    # remains:  W_eff = W_mu + (W_sigma * eps_in) * eps_out.
    w_eff = wmu_ref[...] + wsig_in_ref[...] * eps_out_ref[...]
    # Fused "concat": x @ W == latent @ W[:L] + recurrent @ W[L:]  (two MXU dots).
    acc = jnp.dot(lat_ref[...], w_eff[:split, :],
                  preferred_element_type=jnp.float32)
    acc = acc + jnp.dot(rec_ref[...], w_eff[split:, :],
                        preferred_element_type=jnp.float32)
    o_ref[...] = acc + beff_ref[...]


def controller_forward(latent, recurrent, kparams, actions):
    """Pallas forward: grid-free, whole-problem VMEM residency."""
    B, L = latent.shape
    a_pad = kparams["w_mu"].shape[1]

    operands = (latent, recurrent,
                kparams["w_mu"], kparams["w_sigma_in"],
                kparams["eps_out"], kparams["b_eff"])

    vmem = pl.BlockSpec(memory_space=pltpu.MemorySpace.VMEM)
    out = pl.pallas_call(
        functools.partial(noisy_linear_kernel, split=L),
        in_specs=[vmem] * len(operands),
        out_specs=vmem,
        out_shape=jax.ShapeDtypeStruct((B, a_pad), jnp.float32),
    )(*operands)
    return out[:, :actions]


def init_noisy_linear(key, in_features, out_features, std_init=0.5):
    """Deterministic synthetic params matching NoisyLinear.__init__ / reset_noise."""
    k_mu_w, k_mu_b, k_eps_in, k_eps_out = jax.random.split(key, 4)
    mu_range = 1.0 / jnp.sqrt(in_features)

    # Parameters (stored as (in, out) — transposed vs. torch's (out, in)).
    w_mu = jax.random.uniform(k_mu_w, (in_features, out_features),
                              minval=-mu_range, maxval=mu_range,
                              dtype=jnp.float32)
    w_sigma = jnp.full((in_features, out_features),
                       std_init / jnp.sqrt(in_features), dtype=jnp.float32)
    b_mu = jax.random.uniform(k_mu_b, (1, out_features),
                              minval=-mu_range, maxval=mu_range,
                              dtype=jnp.float32)
    b_sigma = jnp.full((1, out_features),
                       std_init / jnp.sqrt(out_features), dtype=jnp.float32)

    # Factorized Gaussian noise (reset_noise()): keep it factorized.
    def f(v):
        return jnp.sign(v) * jnp.sqrt(jnp.abs(v))

    eps_in = f(jax.random.normal(k_eps_in, (in_features,), jnp.float32))[:, None]    # (F,1)
    eps_out = f(jax.random.normal(k_eps_out, (out_features,), jnp.float32))[None, :]  # (1,A)

    # b_eff only changes on reset_noise(); precompute it once here.
    b_eff = b_mu + b_sigma * eps_out

    return {"w_mu": w_mu, "w_sigma": w_sigma,
            "eps_in": eps_in, "eps_out": eps_out,
            "b_mu": b_mu, "b_sigma": b_sigma, "b_eff": b_eff}


def prepare_kernel_params(params, actions, lane=LANE):
    """One-time (per reset_noise) prep: fold eps_in into w_sigma and pad the
    out-feature dim to a lane multiple so the kernel's store is lane-dense."""
    a_pad = ((actions + lane - 1) // lane) * lane
    pad = a_pad - actions
    pad_cols = lambda a: jnp.pad(a, ((0, 0), (0, pad)))
    return {"w_mu": pad_cols(params["w_mu"]),
            "w_sigma_in": pad_cols(params["w_sigma"] * params["eps_in"]),
            "eps_out": pad_cols(params["eps_out"]),
            "b_eff": pad_cols(params["b_eff"])}


def controller_reference(latent, recurrent, params):
    """Pure-JAX reference with the original torch semantics (concat + single matmul)."""
    x = jnp.concatenate([latent, recurrent], axis=1)
    w_eff = params["w_mu"] + params["w_sigma"] * (params["eps_in"] * params["eps_out"])
    b_eff = params["b_mu"] + params["b_sigma"] * params["eps_out"]
    return x @ w_eff + b_eff


if __name__ == "__main__":
    LATENTS, RECURRENTS, ACTIONS, BATCH = 32, 32, 8, 8

    key = jax.random.PRNGKey(0)
    k_param, k_lat, k_rec = jax.random.split(key, 3)

    params = init_noisy_linear(k_param, LATENTS + RECURRENTS, ACTIONS)
    kparams = prepare_kernel_params(params, ACTIONS)

    latent = jax.random.normal(k_lat, (BATCH, LATENTS), dtype=jnp.float32)
    recurrent = jax.random.normal(k_rec, (BATCH, RECURRENTS), dtype=jnp.float32)

    out = controller_forward(latent, recurrent, kparams, ACTIONS)
    out = jax.block_until_ready(out)

    ref = controller_reference(latent, recurrent, params)
    assert out.shape == (BATCH, ACTIONS)
    assert jnp.allclose(out, ref, atol=1e-5, rtol=1e-5), "mismatch vs reference"

    print("KERNEL_OK")
</pallas_src>

<mosaic_0001>
module attributes {stable_mosaic.version = 11 : i64} {
  func.func @noisy_linear_kernel(%arg0: memref<8x32xf32, #tpu.memory_space<vmem>>, %arg1: memref<8x32xf32, #tpu.memory_space<vmem>>, %arg2: memref<64x128xf32, #tpu.memory_space<vmem>>, %arg3: memref<64x128xf32, #tpu.memory_space<vmem>>, %arg4: memref<1x128xf32, #tpu.memory_space<vmem>>, %arg5: memref<1x128xf32, #tpu.memory_space<vmem>>, %arg6: memref<8x128xf32, #tpu.memory_space<vmem>>) attributes {dimension_semantics = [], scalar_prefetch = 0 : i64, scratch_operands = 0 : i64, tpu.core_type = #tpu.core_type<tc>} {
    %c0 = arith.constant 0 : index
    %c0_0 = arith.constant 0 : index
    %0 = vector.load %arg2[%c0, %c0_0] : memref<64x128xf32, #tpu.memory_space<vmem>>, vector<64x128xf32>
    %c0_1 = arith.constant 0 : index
    %c0_2 = arith.constant 0 : index
    %1 = vector.load %arg3[%c0_1, %c0_2] : memref<64x128xf32, #tpu.memory_space<vmem>>, vector<64x128xf32>
    %c0_3 = arith.constant 0 : index
    %c0_4 = arith.constant 0 : index
    %2 = vector.load %arg4[%c0_3, %c0_4] : memref<1x128xf32, #tpu.memory_space<vmem>>, vector<1x128xf32>
    %3 = vector.broadcast %2 : vector<1x128xf32> to vector<64x128xf32>
    %4 = arith.mulf %1, %3 : vector<64x128xf32>
    %5 = arith.addf %0, %4 : vector<64x128xf32>
    %c0_5 = arith.constant 0 : index
    %c0_6 = arith.constant 0 : index
    %6 = vector.load %arg0[%c0_5, %c0_6] : memref<8x32xf32, #tpu.memory_space<vmem>>, vector<8x32xf32>
    %7 = vector.extract_strided_slice %5 {offsets = [0, 0], sizes = [32, 128], strides = [1, 1]} : vector<64x128xf32> to vector<32x128xf32>
    %cst = arith.constant dense<0.000000e+00> : vector<8x128xf32>
    %8 = tpu.matmul %6, %7, %cst {dimension_numbers = #tpu.dot_dimension_numbers<[1], [0], [0], [1], [0, 0, 1, 1], [], []>} : vector<8x32xf32>, vector<32x128xf32>, vector<8x128xf32> -> vector<8x128xf32>
    %c0_7 = arith.constant 0 : index
    %c0_8 = arith.constant 0 : index
    %9 = vector.load %arg1[%c0_7, %c0_8] : memref<8x32xf32, #tpu.memory_space<vmem>>, vector<8x32xf32>
    %10 = vector.extract_strided_slice %5 {offsets = [32, 0], sizes = [32, 128], strides = [1, 1]} : vector<64x128xf32> to vector<32x128xf32>
    %cst_9 = arith.constant dense<0.000000e+00> : vector<8x128xf32>
    %11 = tpu.matmul %9, %10, %cst_9 {dimension_numbers = #tpu.dot_dimension_numbers<[1], [0], [0], [1], [0, 0, 1, 1], [], []>} : vector<8x32xf32>, vector<32x128xf32>, vector<8x128xf32> -> vector<8x128xf32>
    %12 = arith.addf %8, %11 : vector<8x128xf32>
    %c0_10 = arith.constant 0 : index
    %c0_11 = arith.constant 0 : index
    %13 = vector.load %arg5[%c0_10, %c0_11] : memref<1x128xf32, #tpu.memory_space<vmem>>, vector<1x128xf32>
    %14 = vector.broadcast %13 : vector<1x128xf32> to vector<8x128xf32>
    %15 = arith.addf %12, %14 : vector<8x128xf32>
    %c0_12 = arith.constant 0 : index
    %c0_13 = arith.constant 0 : index
    %16 = vector.load %arg6[%c0_12, %c0_13] : memref<8x128xf32, #tpu.memory_space<vmem>>, vector<8x128xf32>
    tpu.vector_store %arg6[%c0_12, %c0_13], %15 {strides = array<i32>} : memref<8x128xf32, #tpu.memory_space<vmem>>, vector<8x128xf32>,
    return
  }
}

</mosaic_0001>

<bundles_post_ra>
// kernel: tpu_custom_call.1
= control target key start
LH: loop header
LB: loop body
LE: loop exit
PB: predicated region body
PF: predicated region fallthrough
CT: control target
= control target key end

     0   :  { %11 = vsyncpa [#allocation3], 0  ;;  %s395_s0 = inlined_call_operand.hbm [shape: f32[8,32], index: 0, kind: input, shape index: {}]   ;;  %s396_s1 = inlined_call_operand.hbm [shape: f32[8,32], index: 1, kind: input, shape index: {}]   ;;  %s397_s2 = inlined_call_operand.hbm [shape: f32[64,128], index: 2, kind: input, shape index: {}]   ;;  %s398_s3 = inlined_call_operand.hbm [shape: f32[64,128], index: 3, kind: input, shape index: {}]   ;;  %s399_s4 = inlined_call_operand.vmem [shape: f32[1,128], index: 4, kind: input, shape index: {}]   ;;  %s400_s5 = inlined_call_operand.vmem [shape: f32[1,128], index: 5, kind: input, shape index: {}]   ;;  %s401_s6 = inlined_call_operand.hbm [shape: f32[8,128], index: 6, kind: output, shape index: {}]  }
   0x1   :  { %12 = vsyncpa [#allocation6], 0 }
   0x2   :  { %13 = vsyncpa [#allocation9], 0  ;;  %s31_s23 = sshll.u32 %s396_s1, 4  ;;  %s32_s23 = int_to_ptr.hbm [resolvable:$true] %s31_s23 }
   0x3   :  { %14 = vsyncpa [#allocation4], 0  ;;  %s332_s24 = smov [#allocation5]   ;;  %s20_s28 = sshll.u32 %s395_s0, 4  ;;  %s21_s28 = int_to_ptr.hbm [resolvable:$true] %s20_s28 }
   0x4   :  { %s33_s25 = sshll.u32 %s332_s24, 4  ;;  %s333_s29 = smov [#allocation2]   ;;  %s34_s25 = int_to_ptr.vmem [resolvable:$true] %s33_s25 }
   0x5   :  { %36 = dma.hbm_to_vmem [thread:$0]  %s32_s23, 128, %s34_s25, [#allocation6]  }
   0x6   :  { %s22_s30 = sshll.u32 %s333_s29, 4  ;;  %s41_s9 = sshll.u32 %s397_s2, 4  ;;  %s23_s30 = int_to_ptr.vmem [resolvable:$true] %s22_s30  ;;  %s42_s9 = int_to_ptr.hbm [resolvable:$true] %s41_s9 }
   0x7   :  { %25 = dma.hbm_to_vmem [thread:$0]  %s21_s28, 128, %s23_s30, [#allocation3]  }
   0x8   :  { %s334_s1 = smov [#allocation7]   ;;  %s54_s13 = sshll.u32 %s398_s3, 4  ;;  %s55_s13 = int_to_ptr.hbm [resolvable:$true] %s54_s13 }
   0x9   :  { %s43_s10 = sshll.u32 %s334_s1, 4  ;;  %s335_s14 = smov 128   ;;  %s44_s10 = int_to_ptr.vmem [resolvable:$true] %s43_s10 }
   0xa   :  { %s336_s0 = smov 8   ;;  %s337_s15 = smov [#allocation8]  }
   0xb   :  { %49 = dma.hbm_to_vmem [thread:$0]  %s42_s9, 1024, %s44_s10, [#allocation6], %s335_s14, %s335_s14, %s336_s0  }
   0xc   :  { %s56_s16 = sshll.u32 %s337_s15, 4  ;;  %s57_s16 = int_to_ptr.vmem [resolvable:$true] %s56_s16 }
   0xd   :  { %62 = dma.hbm_to_vmem [thread:$0]  %s55_s13, 1024, %s57_s16, [#allocation9], %s335_s14, %s335_s14, %s336_s0  }
   0xe   :  { %324 = dma.done.wait [#allocation3], 128  }
   0xf   :  { %325 = vsyncadd [#allocation3], 4294967168 }
  0x10   :  { %326 = dma.done.wait [#allocation6], 1152  }
  0x11   :  { %327 = vsyncadd [#allocation6], 4294966144 }
  0x12   :  { %328 = dma.done.wait [#allocation9], 1024  }
  0x13   :  { %329 = vsyncadd [#allocation9], 4294966272  ;;  %v98_v0 = vld [vmem:[#allocation8 + $0x38] sm:$0xff]  ;;  %v202_v2 = vld [vmem:[%s399_s4] ss:$0 sm:$0xff]  ;;  %vm121_vm0 = vcmask 261120  }
  0x14   :  { %v90_v1 = vld [vmem:[#allocation7 + $0x38] sm:$0xff]  ;;  %v89_v5 = vld [vmem:[#allocation7 + $0x30] sm:$0xff]  ;;  %v110_v7 = vmul.f32 %v202_v2, %v98_v0  ;;  %v96_v12 = vld [vmem:[#allocation8 + $0x28] sm:$0xff]  ;;  %s338_s18 = smov [#allocation10]   ;;  %s181_s22 = sshll.u32 %s401_s6, 4  ;;  %s182_s22 = int_to_ptr.hbm [resolvable:$true] %s181_s22 }
  0x15   :  { %v94_v3 = vld [vmem:[#allocation8 + $0x18] sm:$0xff]  ;;  %v97_v6 = vld [vmem:[#allocation8 + $0x30] sm:$0xff]  ;;  %v88_v14 = vld [vmem:[#allocation7 + $0x28] sm:$0xff]  ;;  %v108_v15 = vmul.f32 %v202_v2, %v96_v12  ;;  %s179_s19 = sshll.u32 %s338_s18, 4  ;;  %s180_s19 = int_to_ptr.vmem [resolvable:$true] %s179_s19 }
  0x16   :  { %v86_v4 = vld [vmem:[#allocation7 + $0x18] sm:$0xff]  ;;  %v106_v8 = vmul.f32 %v202_v2, %v94_v3  ;;  %v109_v9 = vmul.f32 %v202_v2, %v97_v6  ;;  %v85_v10 = vld [vmem:[#allocation7 + $0x10] sm:$0xff]  ;;  %v84_v16 = vld [vmem:[#allocation7 + $0x8] sm:$0xff]  ;;  %v118_v18 = vadd.f32 %v110_v7, %v90_v1 }
  0x17   :  { %v93_v11 = vld [vmem:[#allocation8 + $0x10] sm:$0xff]  ;;  %v92_v17 = vld [vmem:[#allocation8 + $0x8] sm:$0xff]  ;;  %v95_v22 = vld [vmem:[#allocation8 + $0x20] sm:$0xff]  ;;  %v116_v29 = vadd.f32 %v108_v15, %v88_v14 }
  0x18   :  { %v105_v13 = vmul.f32 %v202_v2, %v93_v11  ;;  %v114_v19 = vadd.f32 %v106_v8, %v86_v4  ;;  %v117_v20 = vadd.f32 %v109_v9, %v89_v5  ;;  %v104_v21 = vmul.f32 %v202_v2, %v92_v17  ;;  %v91_v23 = vld [vmem:[#allocation8] sm:$0xff]  ;;  %137 = vmatpush.msra.mxu0 %v118_v18  ;;  %v120_v33 = vld [vmem:[#allocation5] sm:$0xff]  ;;  %v119_v34 = vld [vmem:[#allocation2] sm:$0xff] }
  0x19   :  { %v87_v25 = vld [vmem:[#allocation7 + $0x20] sm:$0xff]  ;;  %v107_v26 = vmul.f32 %v202_v2, %v95_v22  ;;  %v103_v28 = vmul.f32 %v202_v2, %v91_v23  ;;  %v203_v35 = vld [vmem:[%s400_s5] ss:$0 sm:$0xff] }
  0x1a   :  { %v113_v24 = vadd.f32 %v105_v13, %v85_v10  ;;  %v83_v27 = vld [vmem:[#allocation7] sm:$0xff]  ;;  %160 = vmatpush.msra.mxu1 %v114_v19  ;;  %v112_v30 = vadd.f32 %v104_v21, %v84_v16  ;;  %138 = vmatpush.msra.mxu0 %v117_v20 }
  0x1b   :  { %v115_v31 = vadd.f32 %v107_v26, %v87_v25  ;;  %v111_v32 = vadd.f32 %v103_v28, %v83_v27 }
  0x1c   :  { %161 = vmatpush.msra.mxu1 %v113_v24  ;;  %139 = vmatpush.msra.mxu0 %v116_v29 }
  0x1e   :  { %162 = vmatpush.msra.mxu1 %v112_v30  ;;  %140 = vmatpush.msra.mxu0 %v115_v31 }
  0x1f   :  { %193 = vmatmul.msk.f32.vlgmr.msra.gmra.mxu0 %vm121_vm0, %v120_v33 }
  0x20   :  { %163 = vmatpush.msra.mxu1 %v111_v32 }
  0x21   :  { %194 = vmatmul.msk.f32.vlgmr.msra.gmra.mxu1 %vm121_vm0, %v119_v34 }
  0x9c   :  { %v142_v36 = vpop.f32.mrf.mxu0 }
  0x9e   :  { %v165_v37 = vpop.f32.mrf.mxu1 }
  0x9f   :  { %v166_v38 = vadd.f32 %v165_v37, %v142_v36 }
  0xa1   :  { %v172_v39 = vadd.f32 %v203_v35, %v166_v38 }
  0xa3   :  { %173 = vst [vmem:[#allocation10] sm:$0xff] %v172_v39 }
  0xa4   :  { %184 = dma.vmem_to_hbm [thread:$0]  %s180_s19, 128, %s182_s22, [#allocation4]  }
  0xa5   :  { %330 = dma.done.wait [#allocation4], 128  }
  0xa6   :  { %331 = vsyncadd [#allocation4], 4294967168 }
  0xa7   :  { %189 = vsyncpa [#allocation3], 1 }
  0xa8   :  { %190 = vsyncpa [#allocation6], 1 }
  0xa9   :  { %191 = vsyncpa [#allocation9], 1 }
  0xaa   :  { %192 = vsyncpa [#allocation4], 1 }

</bundles_post_ra>
